<compile_context>
chip_gen: v6e
topology: v6e:2x2x1
jax: 0.10.0
libtpu: 0.0.40
codegen_flags: <defaults>
</compile_context>

<pallas_src>
import jax
import jax.numpy as jnp
from jax import lax
from jax.experimental import pallas as pl
from jax.experimental.pallas import tpu as pltpu

EPS = 1e-5  # torch.nn.LayerNorm default eps
_VMEM_LIMIT = 64 * 1024 * 1024


# ---------------------------------------------------------------------------
# Helpers
# ---------------------------------------------------------------------------
def _sublane_align(dtype):
    dtype = jnp.dtype(dtype)
    if dtype.itemsize == 2:   # bf16 / f16
        return 16
    if dtype.itemsize == 1:   # int8 / fp8
        return 32
    return 8                  # f32


def _pick_tile_rows(R, dtype, tile_rows):
    align = _sublane_align(dtype)
    r_up = ((R + align - 1) // align) * align
    tr = min(tile_rows, r_up)
    tr = max(align, (tr // align) * align)
    return tr


def _pad_rows(x2, tile_rows):
    R = x2.shape[0]
    R_pad = pl.cdiv(R, tile_rows) * tile_rows
    if R_pad != R:
        x2 = jnp.pad(x2, ((0, R_pad - R), (0, 0)))
    return x2, R, R_pad


def _compiler_params():
    return pltpu.CompilerParams(
        dimension_semantics=("parallel",),
        vmem_limit_bytes=_VMEM_LIMIT,
    )


# ---------------------------------------------------------------------------
# Pallas kernels
# ---------------------------------------------------------------------------
def _layernorm_kernel(x_ref, gamma_ref, beta_ref, o_ref):
    # x_ref: (TILE_R, D)   gamma/beta: (1, D)
    x = x_ref[...].astype(jnp.float32)
    mean = jnp.mean(x, axis=-1, keepdims=True)
    centered = x - mean
    var = jnp.mean(centered * centered, axis=-1, keepdims=True)
    inv = lax.rsqrt(var + EPS)
    y = centered * inv
    y = y * gamma_ref[...].astype(jnp.float32) + beta_ref[...].astype(jnp.float32)
    o_ref[...] = y.astype(o_ref.dtype)


def _linear_kernel(x_ref, w_ref, b_ref, o_ref):
    # x_ref: (TILE_R, D_in)   w_ref: (D_out, D_in) [PyTorch layout]   b_ref: (1, D_out)
    acc = lax.dot_general(
        x_ref[...].astype(w_ref.dtype), w_ref[...],
        dimension_numbers=(((1,), (1,)), ((), ())),
        preferred_element_type=jnp.float32,
    )
    o_ref[...] = (acc + b_ref[...].astype(jnp.float32)).astype(o_ref.dtype)


def _prenorm_linear_kernel(x_ref, gamma_ref, beta_ref, w_ref, b_ref, o_ref):
    """Fused: LayerNorm(x) @ W^T + b for one (TILE_R, D_in) row tile."""
    x = x_ref[...].astype(jnp.float32)
    mean = jnp.mean(x, axis=-1, keepdims=True)
    centered = x - mean
    var = jnp.mean(centered * centered, axis=-1, keepdims=True)
    inv = lax.rsqrt(var + EPS)
    y = centered * inv
    y = y * gamma_ref[...].astype(jnp.float32) + beta_ref[...].astype(jnp.float32)
    # Contract trailing axes of (R, D_in) x (D_out, D_in) -> (R, D_out); weight
    # stays in PyTorch layout (no transpose copy in the wrapper).  If the
    # weight is bf16, the LHS is cast to bf16 for full MXU rate (f32 accum).
    acc = lax.dot_general(
        y.astype(w_ref.dtype), w_ref[...],
        dimension_numbers=(((1,), (1,)), ((), ())),
        preferred_element_type=jnp.float32,
    )
    o_ref[...] = (acc + b_ref[...].astype(jnp.float32)).astype(o_ref.dtype)


# ---------------------------------------------------------------------------
# Wrappers
# ---------------------------------------------------------------------------
def layernorm_pallas(x, gamma, beta, *, tile_rows=256):
    """LayerNorm over the last axis of x ([..., D])."""
    orig_shape = x.shape
    D = orig_shape[-1]
    x2 = x.reshape(-1, D)
    tr = _pick_tile_rows(x2.shape[0], x.dtype, tile_rows)
    x2, R, _ = _pad_rows(x2, tr)

    gamma2 = gamma.reshape(1, D)
    beta2 = beta.reshape(1, D)

    out = pl.pallas_call(
        _layernorm_kernel,
        out_shape=jax.ShapeDtypeStruct((x2.shape[0], D), x.dtype),
        grid_spec=pltpu.PrefetchScalarGridSpec(
            num_scalar_prefetch=0,
            grid=(x2.shape[0] // tr,),
            in_specs=[
                pl.BlockSpec((tr, D), lambda i: (i, 0)),
                pl.BlockSpec((1, D), lambda i: (0, 0)),
                pl.BlockSpec((1, D), lambda i: (0, 0)),
            ],
            out_specs=pl.BlockSpec((tr, D), lambda i: (i, 0)),
        ),
        compiler_params=_compiler_params(),
    )(x2, gamma2, beta2)
    return out[:R].reshape(orig_shape)


def linear_pallas(x, weight, bias, *, tile_rows=256):
    """y = x @ weight.T + bias (PyTorch nn.Linear convention, weight: (D_out, D_in))."""
    orig_shape = x.shape
    D_in = orig_shape[-1]
    D_out = weight.shape[0]
    x2 = x.reshape(-1, D_in)
    tr = _pick_tile_rows(x2.shape[0], x.dtype, tile_rows)
    x2, R, _ = _pad_rows(x2, tr)
    b2 = bias.reshape(1, D_out)

    out = pl.pallas_call(
        _linear_kernel,
        out_shape=jax.ShapeDtypeStruct((x2.shape[0], D_out), x.dtype),
        grid_spec=pltpu.PrefetchScalarGridSpec(
            num_scalar_prefetch=0,
            grid=(x2.shape[0] // tr,),
            in_specs=[
                pl.BlockSpec((tr, D_in), lambda i: (i, 0)),
                pl.BlockSpec((D_out, D_in), lambda i: (0, 0)),
                pl.BlockSpec((1, D_out), lambda i: (0, 0)),
            ],
            out_specs=pl.BlockSpec((tr, D_out), lambda i: (i, 0)),
        ),
        compiler_params=_compiler_params(),
    )(x2, weight, b2)
    return out[:R].reshape(orig_shape[:-1] + (D_out,))


def prenorm_linear_pallas(x, gamma, beta, weight, bias, *, tile_rows=256):
    """Fused PreNorm(dim, Linear): Linear(LayerNorm(x)) in one pallas_call."""
    orig_shape = x.shape
    D_in = orig_shape[-1]
    D_out = weight.shape[0]
    x2 = x.reshape(-1, D_in)
    tr = _pick_tile_rows(x2.shape[0], x.dtype, tile_rows)
    x2, R, _ = _pad_rows(x2, tr)

    gamma2 = gamma.reshape(1, D_in)
    beta2 = beta.reshape(1, D_in)
    b2 = bias.reshape(1, D_out)

    # TODO(synk): for very large D_in*D_out (weight > ~16 MiB) add a K-tiled
    # grid axis + f32 VMEM accumulator to respect v7x's 64 MiB VMEM.
    out = pl.pallas_call(
        _prenorm_linear_kernel,
        out_shape=jax.ShapeDtypeStruct((x2.shape[0], D_out), x.dtype),
        grid_spec=pltpu.PrefetchScalarGridSpec(
            num_scalar_prefetch=0,
            grid=(x2.shape[0] // tr,),
            in_specs=[
                pl.BlockSpec((tr, D_in), lambda i: (i, 0)),
                pl.BlockSpec((1, D_in), lambda i: (0, 0)),
                pl.BlockSpec((1, D_in), lambda i: (0, 0)),
                pl.BlockSpec((D_out, D_in), lambda i: (0, 0)),
                pl.BlockSpec((1, D_out), lambda i: (0, 0)),
            ],
            out_specs=pl.BlockSpec((tr, D_out), lambda i: (i, 0)),
        ),
        compiler_params=_compiler_params(),
    )(x2, gamma2, beta2, weight, b2)
    return out[:R].reshape(orig_shape[:-1] + (D_out,))


# ---------------------------------------------------------------------------
# Module equivalents
# ---------------------------------------------------------------------------
class PallasLinear:
    """nn.Linear equivalent (weight: (D_out, D_in), PyTorch layout)."""

    def __init__(self, weight, bias):
        self.weight = weight
        self.bias = bias

    def __call__(self, x):
        return linear_pallas(x, self.weight, self.bias)


class PreNormPallas:
    """Pallas equivalent of `PreNorm(dim, fn)`: fn(LayerNorm(x), **kwargs).

    If `fn` is a PallasLinear (and no kwargs are given), LayerNorm + Linear are
    fused into a single kernel; otherwise LayerNorm runs as its own kernel and
    the arbitrary callable `fn` is applied to its output.
    """

    def __init__(self, dim, fn):
        self.dim = dim
        self.fn = fn
        # nn.LayerNorm default init: weight = ones, bias = zeros
        self.gamma = jnp.ones((dim,), dtype=jnp.float32)
        self.beta = jnp.zeros((dim,), dtype=jnp.float32)

    def __call__(self, x, **kwargs):
        if isinstance(self.fn, PallasLinear) and not kwargs:
            return prenorm_linear_pallas(
                x, self.gamma, self.beta, self.fn.weight, self.fn.bias
            )
        return self.fn(layernorm_pallas(x, self.gamma, self.beta), **kwargs)


# ---------------------------------------------------------------------------
# Demo / correctness check
# ---------------------------------------------------------------------------
def _reference(x, gamma, beta, weight, bias):
    xf = x.astype(jnp.float32)
    mean = jnp.mean(xf, axis=-1, keepdims=True)
    var = jnp.mean((xf - mean) ** 2, axis=-1, keepdims=True)
    y = (xf - mean) / jnp.sqrt(var + EPS)
    y = y * gamma + beta
    return (
        jnp.einsum("bnd,od->bno", y, weight, precision=lax.Precision.HIGHEST)
        + bias
    )


if __name__ == "__main__":
    key = jax.random.PRNGKey(0)
    B, N, D = 2, 8, 128  # batch, seq, dim (lane-dense D = multiple of 128)

    k_x, k_w, k_b = jax.random.split(key, 3)
    x = jax.random.normal(k_x, (B, N, D), dtype=jnp.float32)

    # Wrapped fn: Linear(D, D) in PyTorch weight convention (D_out, D_in).
    weight = jax.random.normal(k_w, (D, D), dtype=jnp.float32) * 0.02
    bias = jax.random.normal(k_b, (D,), dtype=jnp.float32) * 0.02

    prenorm = PreNormPallas(D, PallasLinear(weight, bias))

    out = jax.block_until_ready(prenorm(x))

    ref = _reference(x, prenorm.gamma, prenorm.beta, weight, bias)
    assert out.shape == (B, N, D)
    assert jnp.allclose(out, ref, atol=2e-4, rtol=2e-4), "mismatch vs reference"

    # Also exercise the generic (non-fused) path with an arbitrary fn.
    prenorm_generic = PreNormPallas(D, lambda y: y * 2.0)
    out2 = jax.block_until_ready(prenorm_generic(x))
    ref2 = 2.0 * (
        (x - jnp.mean(x, -1, keepdims=True))
        / jnp.sqrt(jnp.var(x, -1, keepdims=True) + EPS)
    )
    assert jnp.allclose(out2, ref2, atol=2e-4, rtol=2e-4), "LN-only mismatch"

    print("KERNEL_OK")
</pallas_src>

<mosaic_0001>
module attributes {stable_mosaic.version = 11 : i64} {
  func.func @_prenorm_linear_kernel(%arg0: i32, %arg1: memref<16x128xf32, #tpu.memory_space<vmem>>, %arg2: memref<1x128xf32, #tpu.memory_space<vmem>>, %arg3: memref<1x128xf32, #tpu.memory_space<vmem>>, %arg4: memref<128x128xf32, #tpu.memory_space<vmem>>, %arg5: memref<1x128xf32, #tpu.memory_space<vmem>>, %arg6: memref<16x128xf32, #tpu.memory_space<vmem>>) attributes {dimension_semantics = [#tpu.dimension_semantics<parallel>], iteration_bounds = array<i64: 1>, scalar_prefetch = 0 : i64, scratch_operands = 0 : i64, tpu.core_type = #tpu.core_type<tc>, window_params = [{transform_indices = @transform_0, window_bounds = array<i64: 16, 128>}, {pipeline_mode = #tpu.pipeline_mode<synchronous>, transform_indices = @transform_1, window_bounds = array<i64: 1, 128>}, {pipeline_mode = #tpu.pipeline_mode<synchronous>, transform_indices = @transform_2, window_bounds = array<i64: 1, 128>}, {pipeline_mode = #tpu.pipeline_mode<synchronous>, transform_indices = @transform_3, window_bounds = array<i64: 128, 128>}, {pipeline_mode = #tpu.pipeline_mode<synchronous>, transform_indices = @transform_4, window_bounds = array<i64: 1, 128>}, {transform_indices = @transform_5, window_bounds = array<i64: 16, 128>}]} {
    %c0 = arith.constant 0 : index
    %c0_0 = arith.constant 0 : index
    %0 = vector.load %arg1[%c0, %c0_0] : memref<16x128xf32, #tpu.memory_space<vmem>>, vector<16x128xf32>
    %cst = arith.constant dense<0.000000e+00> : vector<16xf32>
    %1 = vector.multi_reduction <add>, %0, %cst [1] : vector<16x128xf32> to vector<16xf32>
    %2 = vector.shape_cast %1 : vector<16xf32> to vector<16x1xf32>
    %cst_1 = arith.constant 1.280000e+02 : f32
    %3 = vector.broadcast %cst_1 : f32 to vector<16x1xf32>
    %4 = arith.divf %2, %3 : vector<16x1xf32>
    %5 = vector.broadcast %4 : vector<16x1xf32> to vector<16x128xf32>
    %6 = arith.subf %0, %5 : vector<16x128xf32>
    %7 = arith.mulf %6, %6 : vector<16x128xf32>
    %cst_2 = arith.constant dense<0.000000e+00> : vector<16xf32>
    %8 = vector.multi_reduction <add>, %7, %cst_2 [1] : vector<16x128xf32> to vector<16xf32>
    %9 = vector.shape_cast %8 : vector<16xf32> to vector<16x1xf32>
    %cst_3 = arith.constant 1.280000e+02 : f32
    %10 = vector.broadcast %cst_3 : f32 to vector<16x1xf32>
    %11 = arith.divf %9, %10 : vector<16x1xf32>
    %cst_4 = arith.constant 9.99999974E-6 : f32
    %12 = vector.broadcast %cst_4 : f32 to vector<16x1xf32>
    %13 = arith.addf %11, %12 : vector<16x1xf32>
    %14 = math.rsqrt %13 : vector<16x1xf32>
    %15 = vector.broadcast %14 : vector<16x1xf32> to vector<16x128xf32>
    %16 = arith.mulf %6, %15 : vector<16x128xf32>
    %c0_5 = arith.constant 0 : index
    %c0_6 = arith.constant 0 : index
    %17 = vector.load %arg2[%c0_5, %c0_6] : memref<1x128xf32, #tpu.memory_space<vmem>>, vector<1x128xf32>
    %18 = vector.broadcast %17 : vector<1x128xf32> to vector<16x128xf32>
    %19 = arith.mulf %16, %18 : vector<16x128xf32>
    %c0_7 = arith.constant 0 : index
    %c0_8 = arith.constant 0 : index
    %20 = vector.load %arg3[%c0_7, %c0_8] : memref<1x128xf32, #tpu.memory_space<vmem>>, vector<1x128xf32>
    %21 = vector.broadcast %20 : vector<1x128xf32> to vector<16x128xf32>
    %22 = arith.addf %19, %21 : vector<16x128xf32>
    %c0_9 = arith.constant 0 : index
    %c0_10 = arith.constant 0 : index
    %23 = vector.load %arg4[%c0_9, %c0_10] : memref<128x128xf32, #tpu.memory_space<vmem>>, vector<128x128xf32>
    %cst_11 = arith.constant dense<0.000000e+00> : vector<16x128xf32>
    %24 = tpu.matmul %22, %23, %cst_11 {dimension_numbers = #tpu.dot_dimension_numbers<[1], [1], [0], [0], [0, 0, 1, 0], [], []>} : vector<16x128xf32>, vector<128x128xf32>, vector<16x128xf32> -> vector<16x128xf32>
    %c0_12 = arith.constant 0 : index
    %c0_13 = arith.constant 0 : index
    %25 = vector.load %arg5[%c0_12, %c0_13] : memref<1x128xf32, #tpu.memory_space<vmem>>, vector<1x128xf32>
    %26 = vector.broadcast %25 : vector<1x128xf32> to vector<16x128xf32>
    %27 = arith.addf %24, %26 : vector<16x128xf32>
    %c0_14 = arith.constant 0 : index
    %c0_15 = arith.constant 0 : index
    %28 = vector.load %arg6[%c0_14, %c0_15] : memref<16x128xf32, #tpu.memory_space<vmem>>, vector<16x128xf32>
    tpu.vector_store %arg6[%c0_14, %c0_15], %27 {strides = array<i32>} : memref<16x128xf32, #tpu.memory_space<vmem>>, vector<16x128xf32>,
    return
  }
  func.func @transform_0(%arg0: i32) -> (i32, i32) {
    %c0_i32 = arith.constant 0 : i32
    %c0_i32_0 = arith.constant 0 : i32
    return %arg0, %c0_i32 : i32, i32
  }
  func.func @transform_1(%arg0: i32) -> (i32, i32) {
    %c0_i32 = arith.constant 0 : i32
    %c0_i32_0 = arith.constant 0 : i32
    %c0_i32_1 = arith.constant 0 : i32
    return %c0_i32, %c0_i32_0 : i32, i32
  }
  func.func @transform_2(%arg0: i32) -> (i32, i32) {
    %c0_i32 = arith.constant 0 : i32
    %c0_i32_0 = arith.constant 0 : i32
    %c0_i32_1 = arith.constant 0 : i32
    return %c0_i32, %c0_i32_0 : i32, i32
  }
  func.func @transform_3(%arg0: i32) -> (i32, i32) {
    %c0_i32 = arith.constant 0 : i32
    %c0_i32_0 = arith.constant 0 : i32
    %c0_i32_1 = arith.constant 0 : i32
    return %c0_i32, %c0_i32_0 : i32, i32
  }
  func.func @transform_4(%arg0: i32) -> (i32, i32) {
    %c0_i32 = arith.constant 0 : i32
    %c0_i32_0 = arith.constant 0 : i32
    %c0_i32_1 = arith.constant 0 : i32
    return %c0_i32, %c0_i32_0 : i32, i32
  }
  func.func @transform_5(%arg0: i32) -> (i32, i32) {
    %c0_i32 = arith.constant 0 : i32
    %c0_i32_0 = arith.constant 0 : i32
    return %arg0, %c0_i32 : i32, i32
  }
}

</mosaic_0001>

<bundles_post_ra>
// kernel: tpu_custom_call.1
= control target key start
LH: loop header
LB: loop body
LE: loop exit
PB: predicated region body
PF: predicated region fallthrough
CT: control target
= control target key end

     0   :  { %10 = vsyncpa [#allocation3], 0  ;;  %s403_s0 = inlined_call_operand.hbm [shape: f32[16,128], index: 0, kind: input, shape index: {}]   ;;  %s404_s1 = inlined_call_operand.vmem [shape: f32[1,128], index: 1, kind: input, shape index: {}]   ;;  %s405_s2 = inlined_call_operand.vmem [shape: f32[1,128], index: 2, kind: input, shape index: {}]   ;;  %s406_s3 = inlined_call_operand.hbm [shape: f32[128,128], index: 3, kind: input, shape index: {}]   ;;  %s407_s4 = inlined_call_operand.vmem [shape: f32[1,128], index: 4, kind: input, shape index: {}]   ;;  %s408_s5 = inlined_call_operand.hbm [shape: f32[16,128], index: 5, kind: output, shape index: {}]  }
   0x1   :  { %11 = vsyncpa [#allocation6], 0 }
   0x2   :  { %12 = vsyncpa [#allocation4], 0  ;;  %s341_s18 = smov [#allocation2]  }
   0x3   :  { %s18_s19 = sshll.u32 %s341_s18, 4  ;;  %s19_s19 = int_to_ptr.vmem [resolvable:$true] %s18_s19 }
   0x4   :  { %s283_s20 = scalar_lea.vmem %s19_s19, 256  ;;  %p288_p1 = scmp.lt.s32.totalorder %s19_s19, %s19_s19 }
   0x5   :  { %p284_p0 = scmp.ne.s32.totalorder %s19_s19, %s283_s20  ;;  %p289_p2 = scmp.lt.s32.totalorder %s283_s20, %s283_s20 }
   0x7   :  { %p290_p3 = por %p289_p2, %p288_p1 }
   0x9   :  { %p291_p4 = pnand %p290_p3, %p284_p0 }
   0xb   :  { %294 = shalt.err (!%p291_p4)
}
   0xc   :  { %s342_s21 = smov 128   ;;  %s343_s22 = smov 8  }
   0xd   :  { %24 = dma.hbm_to_vmem [thread:$0]  %s403_s0, 256, %s19_s19, [#allocation3], %s342_s21, %s342_s21, %s343_s22  }
   0xe   :  { %s344_s25 = smov [#allocation5]  }
   0xf   :  { %s34_s26 = sshll.u32 %s344_s25, 4  ;;  %s35_s26 = int_to_ptr.vmem [resolvable:$true] %s34_s26 }
  0x10   :  { %s303_s27 = scalar_lea.vmem %s35_s26, 2048  ;;  %p308_p6 = scmp.lt.s32.totalorder %s35_s26, %s35_s26 }
  0x11   :  { %p304_p5 = scmp.ne.s32.totalorder %s35_s26, %s303_s27  ;;  %p309_p7 = scmp.lt.s32.totalorder %s303_s27, %s303_s27 }
  0x13   :  { %p310_p8 = por %p309_p7, %p308_p6 }
  0x15   :  { %p311_p9 = pnand %p310_p8, %p304_p5 }
  0x17   :  { %314 = shalt.err (!%p311_p9)
}
  0x18   :  { %40 = dma.hbm_to_vmem [thread:$0]  %s406_s3, 2048, %s35_s26, [#allocation6], %s342_s21, %s342_s21, %s343_s22  }
  0x19   :  { %335 = dma.done.wait [#allocation3], 256  }
  0x1a   :  { %336 = vsyncadd [#allocation3], 4294967040 }
  0x1b   :  { %337 = dma.done.wait [#allocation6], 2048  }
  0x1c   :  { %338 = vsyncadd [#allocation6], 4294965248  ;;  %v49_v0 = vld [vmem:[#allocation2] sm:$0xff]  ;;  %v50_v1 = vld [vmem:[#allocation2 + $0x8] sm:$0xff]  ;;  %s345_s9 = smov [#allocation7]  }
  0x1d   :  { %51 = vadd.xlane.f32.xlu0 %v49_v0  ;;  %v107_v2 = vld [vmem:[#allocation5 + $0x78] sm:$0xff]  ;;  %v106_v3 = vld [vmem:[#allocation5 + $0x70] sm:$0xff]  ;;  %v105_v4 = vld [vmem:[#allocation5 + $0x68] sm:$0xff] }
  0x1e   :  { %231 = vmatprep.subr.mxu0 %v107_v2  ;;  %v104_v5 = vld [vmem:[#allocation5 + $0x60] sm:$0xff]  ;;  %v103_v6 = vld [vmem:[#allocation5 + $0x58] sm:$0xff]  ;;  %v102_v7 = vld [vmem:[#allocation5 + $0x50] sm:$0xff] }
  0x1f   :  { %232 = vmatpush3.xpose.msra.mxu0 %v107_v2  ;;  %v101_v8 = vld [vmem:[#allocation5 + $0x48] sm:$0xff]  ;;  %v100_v9 = vld [vmem:[#allocation5 + $0x40] sm:$0xff]  ;;  %v99_v10 = vld [vmem:[#allocation5 + $0x38] sm:$0xff] }
  0x20   :  { %233 = vmatprep.subr.mxu0 %v106_v3  ;;  %v98_v19 = vld [vmem:[#allocation5 + $0x30] sm:$0xff]  ;;  %v97_v20 = vld [vmem:[#allocation5 + $0x28] sm:$0xff]  ;;  %v96_v21 = vld [vmem:[#allocation5 + $0x20] sm:$0xff] }
  0x21   :  { %53 = vadd.xlane.f32.xlu0 %v50_v1  ;;  %v95_v22 = vld [vmem:[#allocation5 + $0x18] sm:$0xff]  ;;  %v94_v23 = vld [vmem:[#allocation5 + $0x10] sm:$0xff]  ;;  %v93_v24 = vld [vmem:[#allocation5 + $0x8] sm:$0xff] }
  0x22   :  { %v92_v25 = vld [vmem:[#allocation5] sm:$0xff]  ;;  %v210_v33 = vld [vmem:[%s404_s1] ss:$0 sm:$0xff]  ;;  %s197_s1 = sshll.u32 %s345_s9, 4  ;;  %s198_s1 = int_to_ptr.vmem [resolvable:$true] %s197_s1 }
  0x23   :  { %234 = vmatpush3.xpose.msra.mxu0 %v106_v3  ;;  %v211_v35 = vld [vmem:[%s405_s2] ss:$0 sm:$0xff]  ;;  %s315_s2 = scalar_lea.vmem %s198_s1, 256  ;;  %p320_p11 = scmp.lt.s32.totalorder %s198_s1, %s198_s1 }
  0x24   :  { %235 = vmatprep.subr.mxu0 %v105_v4  ;;  %v212_v42 = vld [vmem:[%s407_s4] ss:$0 sm:$0xff]  ;;  %p316_p10 = scmp.ne.s32.totalorder %s198_s1, %s315_s2  ;;  %p321_p12 = scmp.lt.s32.totalorder %s315_s2, %s315_s2 }
  0x26   :  { %p322_p13 = por %p321_p12, %p320_p11 }
  0x27   :  { %236 = vmatpush3.xpose.msra.mxu0 %v105_v4 }
  0x28   :  { %237 = vmatprep.subr.mxu0 %v104_v5  ;;  %p323_p0 = pnand %p322_p13, %p316_p10 }
  0x2b   :  { %238 = vmatpush3.xpose.msra.mxu0 %v104_v5 }
  0x2c   :  { %239 = vmatprep.subr.mxu0 %v103_v6 }
  0x2f   :  { %240 = vmatpush3.xpose.msra.mxu0 %v103_v6 }
  0x30   :  { %241 = vmatprep.subr.mxu0 %v102_v7 }
  0x33   :  { %242 = vmatpush3.xpose.msra.mxu0 %v102_v7 }
  0x34   :  { %243 = vmatprep.subr.mxu0 %v101_v8 }
  0x37   :  { %244 = vmatpush3.xpose.msra.mxu0 %v101_v8 }
  0x38   :  { %245 = vmatprep.subr.mxu0 %v100_v9 }
  0x3b   :  { %246 = vmatpush3.xpose.msra.mxu0 %v100_v9 }
  0x3c   :  { %247 = vmatprep.subr.mxu0 %v99_v10 }
  0x3f   :  { %248 = vmatpush3.xpose.msra.mxu0 %v99_v10 }
  0x40   :  { %249 = vmatprep.subr.mxu0 %v98_v19 }
  0x43   :  { %250 = vmatpush3.xpose.msra.mxu0 %v98_v19 }
  0x44   :  { %251 = vmatprep.subr.mxu0 %v97_v20 }
  0x47   :  { %252 = vmatpush3.xpose.msra.mxu0 %v97_v20 }
  0x48   :  { %253 = vmatprep.subr.mxu0 %v96_v21 }
  0x4b   :  { %254 = vmatpush3.xpose.msra.mxu0 %v96_v21 }
  0x4c   :  { %255 = vmatprep.subr.mxu0 %v95_v22 }
  0x4f   :  { %256 = vmatpush3.xpose.msra.mxu0 %v95_v22 }
  0x50   :  { %257 = vmatprep.subr.mxu0 %v94_v23 }
  0x53   :  { %258 = vmatpush3.xpose.msra.mxu0 %v94_v23 }
  0x54   :  { %259 = vmatprep.subr.mxu0 %v93_v24 }
  0x57   :  { %260 = vmatpush3.xpose.msra.mxu0 %v93_v24 }
  0x58   :  { %261 = vmatprep.subr.mxu0 %v92_v25 }
  0x5b   :  { %262 = vmatpush3.xpose.msra.mxu0 %v92_v25 }
  0xa6   :  { %v52_v11 = vpop.xlane.xlu0 %51 }
  0xa7   :  { %v56_v12 = vmul.f32 0.0078125, %v52_v11 }
  0xa9   :  { %v58_v13 = vsub.f32 %v49_v0, %v56_v12 }
  0xaa   :  { %v54_v14 = vpop.xlane.xlu0 %53 }
  0xab   :  { %v57_v15 = vmul.f32 0.0078125, %v54_v14  ;;  %v60_v16 = vmul.f32 %v58_v13, %v58_v13 }
  0xad   :  { %v59_v17 = vsub.f32 %v50_v1, %v57_v15  ;;  %62 = vadd.xlane.f32.xlu1 %v60_v16 }
  0xaf   :  { %v61_v18 = vmul.f32 %v59_v17, %v59_v17 }
  0xb1   :  { %64 = vadd.xlane.f32.xlu1 %v61_v18 }
 0x136   :  { %v63_v26 = vpop.xlane.xlu1 %62 }
 0x137   :  { %v66_v27 = vmul.f32 0.0078125, %v63_v26 }
 0x139   :  { %v68_v28 = vadd.f32 1e-05, %v66_v27 }
 0x13a   :  { %v65_v29 = vpop.xlane.xlu1 %64 }
 0x13b   :  { %271 = vrsqrt.f32 %v68_v28  ;;  %v67_v30 = vmul.f32 0.0078125, %v65_v29 }
 0x13d   :  { %v69_v31 = vadd.f32 1e-05, %v67_v30 }
 0x13f   :  { %273 = vrsqrt.f32 %v69_v31 }
 0x148   :  { %v272_v32 = vpop.eup %271 }
 0x149   :  { %v72_v34 = vmul.f32 %v272_v32, %v58_v13 }
 0x14b   :  { %v81_v36 = vmul.f32 %v210_v33, %v72_v34 }
 0x14c   :  { %v274_v37 = vpop.eup %273 }
 0x14d   :  { %v73_v38 = vmul.f32 %v274_v37, %v59_v17  ;;  %v90_v39 = vadd.f32 %v211_v35, %v81_v36 }
 0x14f   :  { %v82_v40 = vmul.f32 %v210_v33, %v73_v38  ;;  %263 = vmatprep.mubr.f32.mxu0 %v90_v39 }
 0x151   :  { %v91_v41 = vadd.f32 %v211_v35, %v82_v40 }
 0x153   :  { %264 = vmatmul.mubr.f32.vlgmr.msra.gmra.mxu0 %v91_v41 }
 0x213   :  { %v265_v43 = vpop.f32.mrf.mxu0 }
 0x214   :  { %v187_v44 = vadd.f32 %v265_v43, %v212_v42 }
 0x215   :  { %v181_v45 = vpop.f32.mrf.mxu0 }
 0x216   :  { %191 = vst [vmem:[#allocation7 + $0x8] sm:$0xff] %v187_v44  ;;  %v182_v46 = vadd.f32 %v212_v42, %v181_v45 }
 0x218   :  { %190 = vst [vmem:[#allocation7] sm:$0xff] %v182_v46 }
 0x219   :  { %326 = shalt.err (!%p323_p0)
}
 0x21a   :  { %203 = dma.vmem_to_hbm [thread:$0]  %s198_s1, 256, %s408_s5, [#allocation4], %s342_s21, %s342_s21, %s343_s22  }
 0x21b   :  { %339 = dma.done.wait [#allocation4], 256  }
 0x21c   :  { %340 = vsyncadd [#allocation4], 4294967040 }
 0x21d   :  { %207 = vsyncpa [#allocation3], 1 }
 0x21e   :  { %208 = vsyncpa [#allocation6], 1 }
 0x21f   :  { %209 = vsyncpa [#allocation4], 1 }

</bundles_post_ra>
